<compile_context>
chip_gen: v6e
topology: v6e:2x2x1
jax: 0.10.0
libtpu: 0.0.40
codegen_flags: <defaults>
</compile_context>

<pallas_src>
import functools

import jax
import jax.numpy as jnp
from jax.experimental import pallas as pl
from jax.experimental.pallas import tpu as pltpu


# ----------------------------------------------------------------------------
# Fused kernel (built per (hw_true, hw_pad) so padding handling is static).
#   x_ref : (B_TILE, C, HW_pad)   input block, HW_pad (multiple of 128) on lanes
#   w1_ref: (C, Ch)               fc1 weight, pre-transposed in the wrapper
#   b1_ref: (1, Ch)               fc1 bias (row)
#   w2_ref: (Ch, C)               fc2 weight, pre-transposed in the wrapper
#   b2_ref: (1, C)                fc2 bias (row)
#   o_ref : (B_TILE, C, HW_pad)
# ----------------------------------------------------------------------------
def _make_band_attn_kernel(hw_true, hw_pad):
    need_mask = hw_pad != hw_true
    inv_hw = 1.0 / float(hw_true)

    def kernel(x_ref, w1_ref, b1_ref, w2_ref, b2_ref, o_ref):
        x = x_ref[...]                                   # (BT, C, HWp) input dtype
        xf = x.astype(jnp.float32)

        # Global average pooling: padded lanes are zero, so the sum is exact;
        # divide by the TRUE spatial size.
        favg = jnp.sum(xf, axis=2) * inv_hw              # (BT, C)

        # Global max pooling: mask padded lanes to -inf when padding exists.
        if need_mask:
            lane = jax.lax.broadcasted_iota(jnp.int32, (1, 1, hw_pad), 2)
            xm = jnp.where(lane < hw_true, xf, -jnp.inf)
        else:
            xm = xf
        fmax = jnp.max(xm, axis=2)                        # (BT, C)

        w1 = w1_ref[...]                                  # (C, Ch)
        b1 = b1_ref[...]                                  # (1, Ch)
        w2 = w2_ref[...]                                  # (Ch, C)
        b2 = b2_ref[...]                                  # (1, C)

        # TODO(synk): nn.Dropout is identity in eval mode; training-mode
        # dropout is not implemented.
        def fcnet(f):                                     # (BT, C) -> (BT, C)
            h = jnp.tanh(jnp.dot(f, w1, preferred_element_type=jnp.float32) + b1)
            return jnp.tanh(jnp.dot(h, w2, preferred_element_type=jnp.float32) + b2)

        gate = jax.nn.sigmoid(fcnet(favg) + fcnet(fmax))  # (BT, C), f32

        # Broadcast multiply over the lane (spatial) axis; store in I/O dtype.
        o_ref[...] = x * gate[:, :, None].astype(x.dtype)

    return kernel


def _vmem_budget_bytes():
    """Per-generation VMEM capacity with ~25% headroom (fallback: v7x 64 MiB)."""
    try:
        cap = int(pltpu.get_tpu_info().vmem_capacity_bytes)
        if cap < (16 << 20):
            cap = 64 << 20
    except Exception:
        cap = 64 << 20
    return (cap * 3) // 4


def _choose_b_tile(b, c, hw_pad, itemsize, budget):
    """Largest divisor of b whose double-buffered in+out block fits VMEM and
    is roughly a few MiB, while keeping >=2 grid steps when b >= 2."""
    per_image = c * hw_pad * itemsize
    # double-buffered input + output => ~4 copies of the block resident
    max_by_vmem = max(1, budget // (4 * per_image))
    target = max(1, (4 << 20) // per_image)               # ~4 MiB blocks
    bt = max(1, min(b, max_by_vmem, target))
    # keep at least 2 grid steps (megacore sharding + pipelining) when possible
    while bt > 1 and (b // bt) < 2:
        bt -= 1
    # make it a divisor of b
    while b % bt != 0:
        bt -= 1
    return bt


# ----------------------------------------------------------------------------
# Wrapper: lane-dense (pad HW to a 128 multiple), batch-tiled pallas_call.
# ----------------------------------------------------------------------------
@functools.partial(jax.jit, static_argnames=())
def band_attention_forward(x, params):
    b, c, h, w = x.shape
    hw = h * w
    hw_pad = ((hw + 127) // 128) * 128
    ch = params["w1"].shape[0]
    itemsize = jnp.dtype(x.dtype).itemsize

    x3 = x.reshape(b, c, hw)
    if hw_pad != hw:
        x3 = jnp.pad(x3, ((0, 0), (0, 0), (0, hw_pad - hw)))   # zeros: avg-safe

    # Pre-transpose weights / reshape biases outside the kernel (one-time).
    w1_t = params["w1"].T.astype(jnp.float32)                  # (C, Ch)
    b1_r = params["b1"].reshape(1, ch).astype(jnp.float32)
    w2_t = params["w2"].T.astype(jnp.float32)                  # (Ch, C)
    b2_r = params["b2"].reshape(1, c).astype(jnp.float32)

    budget = _vmem_budget_bytes()
    b_tile = _choose_b_tile(b, c, hw_pad, itemsize, budget)
    grid = (b // b_tile,)
    # TODO(synk): if even a single-image block exceeds the VMEM budget
    # (huge feature maps on v7x), a two-phase HBM-streaming variant
    # (reduce pass + gate pass) would be needed; not implemented here.

    flops = 4 * b * c * hw + 8 * b * c * ch
    transcendentals = 2 * b * (ch + c) + b * c
    bytes_accessed = itemsize * 2 * b * c * hw_pad + 4 * (2 * c * ch + ch + c)

    kernel = _make_band_attn_kernel(hw, hw_pad)

    out3 = pl.pallas_call(
        kernel,
        out_shape=jax.ShapeDtypeStruct((b, c, hw_pad), x.dtype),
        grid=grid,
        in_specs=[
            pl.BlockSpec((b_tile, c, hw_pad), lambda i: (i, 0, 0)),
            pl.BlockSpec((c, ch), lambda i: (0, 0)),
            pl.BlockSpec((1, ch), lambda i: (0, 0)),
            pl.BlockSpec((ch, c), lambda i: (0, 0)),
            pl.BlockSpec((1, c), lambda i: (0, 0)),
        ],
        out_specs=pl.BlockSpec((b_tile, c, hw_pad), lambda i: (i, 0, 0)),
        compiler_params=pltpu.CompilerParams(
            dimension_semantics=("parallel",),
            vmem_limit_bytes=budget,
        ),
        cost_estimate=pl.CostEstimate(
            flops=flops,
            transcendentals=transcendentals,
            bytes_accessed=bytes_accessed,
        ),
    )(x3, w1_t, b1_r, w2_t, b2_r)

    if hw_pad != hw:
        out3 = out3[:, :, :hw]
    return out3.reshape(b, c, h, w)


# ----------------------------------------------------------------------------
# Deterministic synthetic parameters (PyTorch Linear weight layouts).
# ----------------------------------------------------------------------------
def make_params(key, c, reduction):
    ch = c // reduction
    ks = jax.random.split(key, 4)
    w1 = 0.2 * jax.random.normal(ks[0], (ch, c), jnp.float32)   # fc1.weight (out, in)
    b1 = 0.05 * jax.random.normal(ks[1], (ch,), jnp.float32)    # fc1.bias
    w2 = 0.2 * jax.random.normal(ks[2], (c, ch), jnp.float32)   # fc2.weight (out, in)
    b2 = 0.05 * jax.random.normal(ks[3], (c,), jnp.float32)     # fc2.bias
    return {"w1": w1, "b1": b1, "w2": w2, "b2": b2}


# ----------------------------------------------------------------------------
# Pure-JAX reference mirroring the PyTorch forward (eval mode).
# ----------------------------------------------------------------------------
def reference(x, params):
    favg = jnp.mean(x, axis=(2, 3))                 # AvgPool2d((H,W)) + squeeze
    fmax = jnp.max(x, axis=(2, 3))                  # MaxPool2d((H,W)) + squeeze

    def fcnet(v):
        h1 = jnp.tanh(v @ params["w1"].T + params["b1"])
        return jnp.tanh(h1 @ params["w2"].T + params["b2"])

    m = jax.nn.sigmoid(fcnet(favg) + fcnet(fmax))   # (B, C)
    return x * m[:, :, None, None]


if __name__ == "__main__":
    B, C, H, W = 2, 64, 16, 16
    REDUCTION = 4

    kx, kp = jax.random.split(jax.random.PRNGKey(0))
    x = jax.random.normal(kx, (B, C, H, W), jnp.float32)
    params = make_params(kp, C, REDUCTION)

    out = band_attention_forward(x, params)
    out = jax.block_until_ready(out)

    ref = reference(x, params)
    assert out.shape == (B, C, H, W)
    assert jnp.allclose(out, ref, atol=1e-4, rtol=1e-4), "mismatch vs JAX reference"

    print("KERNEL_OK")
</pallas_src>

<mosaic_0001>
module attributes {stable_mosaic.version = 11 : i64} {
  func.func @kernel(%arg0: i32, %arg1: memref<1x64x256xf32, #tpu.memory_space<vmem>>, %arg2: memref<64x16xf32, #tpu.memory_space<vmem>>, %arg3: memref<1x16xf32, #tpu.memory_space<vmem>>, %arg4: memref<16x64xf32, #tpu.memory_space<vmem>>, %arg5: memref<1x64xf32, #tpu.memory_space<vmem>>, %arg6: memref<1x64x256xf32, #tpu.memory_space<vmem>>) attributes {dimension_semantics = [#tpu.dimension_semantics<parallel>], iteration_bounds = array<i64: 2>, scalar_prefetch = 0 : i64, scratch_operands = 0 : i64, tpu.core_type = #tpu.core_type<tc>, window_params = [{transform_indices = @transform_0, window_bounds = array<i64: 1, 64, 256>}, {pipeline_mode = #tpu.pipeline_mode<synchronous>, transform_indices = @transform_1, window_bounds = array<i64: 64, 16>}, {pipeline_mode = #tpu.pipeline_mode<synchronous>, transform_indices = @transform_2, window_bounds = array<i64: 1, 16>}, {pipeline_mode = #tpu.pipeline_mode<synchronous>, transform_indices = @transform_3, window_bounds = array<i64: 16, 64>}, {pipeline_mode = #tpu.pipeline_mode<synchronous>, transform_indices = @transform_4, window_bounds = array<i64: 1, 64>}, {transform_indices = @transform_5, window_bounds = array<i64: 1, 64, 256>}]} {
    %c0 = arith.constant 0 : index
    %c0_0 = arith.constant 0 : index
    %c0_1 = arith.constant 0 : index
    %0 = vector.load %arg1[%c0, %c0_0, %c0_1] : memref<1x64x256xf32, #tpu.memory_space<vmem>>, vector<1x64x256xf32>
    %cst = arith.constant dense<0.000000e+00> : vector<1x64xf32>
    %1 = vector.multi_reduction <add>, %0, %cst [2] : vector<1x64x256xf32> to vector<1x64xf32>
    %cst_2 = arith.constant 3.906250e-03 : f32
    %2 = vector.broadcast %cst_2 : f32 to vector<1x64xf32>
    %3 = arith.mulf %1, %2 : vector<1x64xf32>
    %cst_3 = arith.constant dense<0xFF800000> : vector<1x64xf32>
    %4 = vector.multi_reduction <maximumf>, %0, %cst_3 [2] : vector<1x64x256xf32> to vector<1x64xf32>
    %c0_4 = arith.constant 0 : index
    %c0_5 = arith.constant 0 : index
    %5 = vector.load %arg2[%c0_4, %c0_5] : memref<64x16xf32, #tpu.memory_space<vmem>>, vector<64x16xf32>
    %c0_6 = arith.constant 0 : index
    %c0_7 = arith.constant 0 : index
    %6 = vector.load %arg3[%c0_6, %c0_7] : memref<1x16xf32, #tpu.memory_space<vmem>>, vector<1x16xf32>
    %c0_8 = arith.constant 0 : index
    %c0_9 = arith.constant 0 : index
    %7 = vector.load %arg4[%c0_8, %c0_9] : memref<16x64xf32, #tpu.memory_space<vmem>>, vector<16x64xf32>
    %c0_10 = arith.constant 0 : index
    %c0_11 = arith.constant 0 : index
    %8 = vector.load %arg5[%c0_10, %c0_11] : memref<1x64xf32, #tpu.memory_space<vmem>>, vector<1x64xf32>
    %cst_12 = arith.constant dense<0.000000e+00> : vector<1x16xf32>
    %9 = tpu.matmul %3, %5, %cst_12 {dimension_numbers = #tpu.dot_dimension_numbers<[1], [0], [0], [1], [0, 0, 1, 1], [], []>} : vector<1x64xf32>, vector<64x16xf32>, vector<1x16xf32> -> vector<1x16xf32>
    %10 = arith.addf %9, %6 : vector<1x16xf32>
    %11 = math.tanh %10 : vector<1x16xf32>
    %cst_13 = arith.constant dense<0.000000e+00> : vector<1x64xf32>
    %12 = tpu.matmul %11, %7, %cst_13 {dimension_numbers = #tpu.dot_dimension_numbers<[1], [0], [0], [1], [0, 0, 1, 1], [], []>} : vector<1x16xf32>, vector<16x64xf32>, vector<1x64xf32> -> vector<1x64xf32>
    %13 = arith.addf %12, %8 : vector<1x64xf32>
    %14 = math.tanh %13 : vector<1x64xf32>
    %cst_14 = arith.constant dense<0.000000e+00> : vector<1x16xf32>
    %15 = tpu.matmul %4, %5, %cst_14 {dimension_numbers = #tpu.dot_dimension_numbers<[1], [0], [0], [1], [0, 0, 1, 1], [], []>} : vector<1x64xf32>, vector<64x16xf32>, vector<1x16xf32> -> vector<1x16xf32>
    %16 = arith.addf %15, %6 : vector<1x16xf32>
    %17 = math.tanh %16 : vector<1x16xf32>
    %cst_15 = arith.constant dense<0.000000e+00> : vector<1x64xf32>
    %18 = tpu.matmul %17, %7, %cst_15 {dimension_numbers = #tpu.dot_dimension_numbers<[1], [0], [0], [1], [0, 0, 1, 1], [], []>} : vector<1x16xf32>, vector<16x64xf32>, vector<1x64xf32> -> vector<1x64xf32>
    %19 = arith.addf %18, %8 : vector<1x64xf32>
    %20 = math.tanh %19 : vector<1x64xf32>
    %21 = arith.addf %14, %20 : vector<1x64xf32>
    %22 = arith.negf %21 : vector<1x64xf32>
    %23 = math.exp %22 : vector<1x64xf32>
    %cst_16 = arith.constant 1.000000e+00 : f32
    %24 = vector.broadcast %cst_16 : f32 to vector<1x64xf32>
    %25 = arith.addf %24, %23 : vector<1x64xf32>
    %26 = arith.divf %24, %25 : vector<1x64xf32>
    %27 = vector.shape_cast %26 : vector<1x64xf32> to vector<1x64x1xf32>
    %28 = vector.broadcast %27 : vector<1x64x1xf32> to vector<1x64x256xf32>
    %29 = arith.mulf %0, %28 : vector<1x64x256xf32>
    %c0_17 = arith.constant 0 : index
    %c0_18 = arith.constant 0 : index
    %c0_19 = arith.constant 0 : index
    %30 = vector.load %arg6[%c0_17, %c0_18, %c0_19] : memref<1x64x256xf32, #tpu.memory_space<vmem>>, vector<1x64x256xf32>
    tpu.vector_store %arg6[%c0_17, %c0_18, %c0_19], %29 {strides = array<i32>} : memref<1x64x256xf32, #tpu.memory_space<vmem>>, vector<1x64x256xf32>,
    return
  }
  func.func @transform_0(%arg0: i32) -> (i32, i32, i32) {
    %c0_i32 = arith.constant 0 : i32
    %c0_i32_0 = arith.constant 0 : i32
    %c0_i32_1 = arith.constant 0 : i32
    return %arg0, %c0_i32, %c0_i32_0 : i32, i32, i32
  }
  func.func @transform_1(%arg0: i32) -> (i32, i32) {
    %c0_i32 = arith.constant 0 : i32
    %c0_i32_0 = arith.constant 0 : i32
    %c0_i32_1 = arith.constant 0 : i32
    return %c0_i32, %c0_i32_0 : i32, i32
  }
  func.func @transform_2(%arg0: i32) -> (i32, i32) {
    %c0_i32 = arith.constant 0 : i32
    %c0_i32_0 = arith.constant 0 : i32
    %c0_i32_1 = arith.constant 0 : i32
    return %c0_i32, %c0_i32_0 : i32, i32
  }
  func.func @transform_3(%arg0: i32) -> (i32, i32) {
    %c0_i32 = arith.constant 0 : i32
    %c0_i32_0 = arith.constant 0 : i32
    %c0_i32_1 = arith.constant 0 : i32
    return %c0_i32, %c0_i32_0 : i32, i32
  }
  func.func @transform_4(%arg0: i32) -> (i32, i32) {
    %c0_i32 = arith.constant 0 : i32
    %c0_i32_0 = arith.constant 0 : i32
    %c0_i32_1 = arith.constant 0 : i32
    return %c0_i32, %c0_i32_0 : i32, i32
  }
  func.func @transform_5(%arg0: i32) -> (i32, i32, i32) {
    %c0_i32 = arith.constant 0 : i32
    %c0_i32_0 = arith.constant 0 : i32
    %c0_i32_1 = arith.constant 0 : i32
    return %arg0, %c0_i32, %c0_i32_0 : i32, i32, i32
  }
}

</mosaic_0001>

<bundles_post_ra>
// kernel: band_attention_forward.1
= control target key start
LH: loop header
LB: loop body
LE: loop exit
PB: predicated region body
PF: predicated region fallthrough
CT: control target
= control target key end

     0   :  { %s1000_s18 = smov 0   ;;  %s1279_s0 = inlined_call_operand.vmem [shape: f32[2,64,256], index: 0, kind: input, shape index: {}]   ;;  %s1280_s1 = inlined_call_operand.vmem [shape: f32[64,16], index: 1, kind: input, shape index: {}]   ;;  %s1281_s2 = inlined_call_operand.vmem [shape: f32[1,16], index: 2, kind: input, shape index: {}]   ;;  %s1282_s3 = inlined_call_operand.vmem [shape: f32[16,64], index: 3, kind: input, shape index: {}]   ;;  %s1283_s4 = inlined_call_operand.vmem [shape: f32[1,64], index: 4, kind: input, shape index: {}]   ;;  %s1284_s5 = inlined_call_operand.vmem [shape: f32[2,64,256], index: 5, kind: output, shape index: {}]  }
   0x1 LB: > { %s844_s19 = sadd.s32 4294967295, %s966_s18   ;;  %p848_p0 = scmp.ge.s32.totalorder %s966_s18, 1  ;;  %s966_s18 = sphi %s1000_s18, %s15_s18  }
   0x2   : > { %p187_p1 = scmp.lt.s32.totalorder %s966_s18, 3 }
   0x4   : > { %p188_p2 = pnand %p848_p0, %p187_p1 }
   0x5   : > { %p215_p3 = scmp.lt.s32.totalorder (!%p188_p2), %s844_s19, 1 }
   0x6   : > { %191 = sbr.rel (%p188_p2) target bundleno = 986 (0x3da), region = 40 }
   0xb   : > { %s1286_s19 = smov (!%p215_p3, %s844_s19), 1  ;;  %v968_v24 = vmov 0.0   ;;  %v1068_v25 = vld [vmem:[%s1280_s1 + $0x38] sm:$0xff]  ;;  %v1075_v26 = vld [vmem:[%s1280_s1 + $0x30] sm:$0xff]  ;;  %v1083_v27 = vld [vmem:[%s1280_s1 + $0x28] sm:$0xff]  ;;  %vm969_vm0 = vmmov 0   ;;  %v317_v41 = vlaneseq }
   0xc   : > { %s860_s20 = sshll.u32 %s1286_s19, 7  ;;  %886 = vmatprep.subr.mxu0 %v968_v24  ;;  %905 = vmatprep.subr.mxu1 %v968_v24  ;;  %v1090_v28 = vld [vmem:[%s1280_s1 + $0x20] sm:$0xff]  ;;  %v1097_v29 = vld [vmem:[%s1280_s1 + $0x18] sm:$0xff]  ;;  %v1104_v30 = vld [vmem:[%s1280_s1 + $0x10] sm:$0xff]  ;;  %vm328_vm1 = vcmask 130112   ;;  %vm335_vm2 = vcmask 195712  }
   0xd   : > { %s219_s23 = scalar_lea.vmem %s1279_s0, %s860_s20  ;;  %887 = vmatpush3.msra.mxu0 %v1068_v25  ;;  %v1111_v31 = vld [vmem:[%s1280_s1 + $0x8] sm:$0xff]  ;;  %v1117_v32 = vld [vmem:[%s1280_s1] sm:$0xff]  ;;  %902 = vmatprep.mubr.msk.f32.mxu0 %vm969_vm0, %v968_v24  ;;  %v318_v42 = vand.u32 127, %v317_v41  ;;  %v1142_v43 = vshrl.u32 %v317_v41, 7  ;;  %vm342_vm3 = vcmask 261312   ;;  %vm349_vm4 = vcmask 326912   ;;  %s1242_s28 = scalar_lea.vmem %s1284_s5, %s860_s20 }
   0xe   : > { %v1016_v0 = vld [vmem:[%s219_s23] sm:$0xff]  ;;  %v1018_v1 = vld [vmem:[%s219_s23 + $0x8] sm:$0xff]  ;;  %v1026_v5 = vld [vmem:[%s219_s23 + $0x10] sm:$0xff]  ;;  %888 = vmatprep.subr.mxu0 %v968_v24  ;;  %909 = vmatprep.mubr.msk.f32.mxu1 %vm969_vm0, %v968_v24  ;;  %vm356_vm5 = vcmask 392512   ;;  %vm363_vm6 = vcmask 458112   ;;  %vm370_vm7 = vcmask 523712  }
   0xf   : > { %v1020_v2 = vld [vmem:[%s219_s23 + $0x20] sm:$0xff]  ;;  %v241_v3 = vadd.f32 %v1018_v1, %v1016_v0  ;;  %v1024_v4 = vld [vmem:[%s219_s23 + $0x28] sm:$0xff]  ;;  %v1028_v6 = vld [vmem:[%s219_s23 + $0x18] sm:$0xff]  ;;  %889 = vmatpush3.msra.mxu0 %v1075_v26  ;;  %v273_v33 = vmax.f32 %v1016_v0, %v1018_v1  ;;  %v323_v44 = vadd.s32 4294967288, %v318_v42  ;;  %v330_v46 = vadd.s32 4294967280, %v318_v42 }
  0x10   : > { %v247_v7 = vadd.f32 %v1024_v4, %v1020_v2  ;;  %v1032_v8 = vld [vmem:[%s219_s23 + $0x30] sm:$0xff]  ;;  %v1034_v9 = vld [vmem:[%s219_s23 + $0x38] sm:$0xff]  ;;  %v244_v10 = vadd.f32 %v1028_v6, %v1026_v5  ;;  %v1040_v12 = vld [vmem:[%s219_s23 + $0x40] sm:$0xff]  ;;  %890 = vmatprep.subr.mxu0 %v968_v24  ;;  %v276_v34 = vmax.f32 %v1026_v5, %v1028_v6  ;;  %v279_v35 = vmax.f32 %v1020_v2, %v1024_v4 }
  0x11   : > { %242 = vadd.xlane.f32.xlu0 %v241_v3  ;;  %v250_v11 = vadd.f32 %v1034_v9, %v1032_v8  ;;  %v1042_v13 = vld [vmem:[%s219_s23 + $0x48] sm:$0xff]  ;;  %v1044_v14 = vld [vmem:[%s219_s23 + $0x50] sm:$0xff]  ;;  %v1046_v15 = vld [vmem:[%s219_s23 + $0x58] sm:$0xff]  ;;  %891 = vmatpush3.msra.mxu0 %v1083_v27  ;;  %v282_v36 = vmax.f32 %v1032_v8, %v1034_v9  ;;  %v337_v47 = vadd.s32 4294967272, %v318_v42  ;;  %v1145_v49 = vsub.s32 %v318_v42, %v1142_v43 }
  0x12   : > { %248 = vadd.xlane.f32.xlu1 %v247_v7  ;;  %v253_v16 = vadd.f32 %v1042_v13, %v1040_v12  ;;  %v256_v17 = vadd.f32 %v1046_v15, %v1044_v14  ;;  %v1052_v18 = vld [vmem:[%s219_s23 + $0x60] sm:$0xff]  ;;  %v1054_v19 = vld [vmem:[%s219_s23 + $0x68] sm:$0xff]  ;;  %v1056_v20 = vld [vmem:[%s219_s23 + $0x70] sm:$0xff]  ;;  %892 = vmatprep.subr.mxu0 %v968_v24  ;;  %v285_v37 = vmax.f32 %v1040_v12, %v1042_v13  ;;  %v344_v52 = vadd.s32 4294967264, %v318_v42 }
  0x13   : > { %v1058_v21 = vld [vmem:[%s219_s23 + $0x78] sm:$0xff]  ;;  %v259_v22 = vadd.f32 %v1054_v19, %v1052_v18  ;;  %893 = vmatpush3.msra.mxu0 %v1090_v28  ;;  %v288_v38 = vmax.f32 %v1044_v14, %v1046_v15  ;;  %v291_v39 = vmax.f32 %v1052_v18, %v1054_v19  ;;  %v1148_v51 = vsub.s32 %v323_v44, %v1142_v43 }
  0x14   : > { %v262_v23 = vadd.f32 %v1058_v21, %v1056_v20  ;;  %894 = vmatprep.subr.mxu0 %v968_v24  ;;  %v294_v40 = vmax.f32 %v1056_v20, %v1058_v21  ;;  %v1151_v53 = vsub.s32 %v330_v46, %v1142_v43  ;;  %v1154_v56 = vsub.s32 %v337_v47, %v1142_v43 }
  0x15   : > { %245 = vadd.xlane.f32.xlu0 %v244_v10  ;;  %895 = vmatpush3.msra.mxu0 %v1097_v29  ;;  %v351_v57 = vadd.s32 4294967256, %v318_v42  ;;  %v1159_v63 = vsub.s32 %v344_v52, %v1142_v43  ;;  %v358_v3 = vadd.s32 4294967248, %v318_v42  ;;  %vm372_vm8 = vcmask 523264  }
  0x16   : > { %251 = vadd.xlane.f32.xlu1 %v250_v11  ;;  %896 = vmatprep.subr.mxu0 %v968_v24  ;;  %vm446_vm9 = vcmask 130048  }
  0x17   : > { %897 = vmatpush3.msra.mxu0 %v1104_v30 }
  0x18   : > { %898 = vmatprep.subr.mxu0 %v968_v24 }
  0x19   : > { %254 = vadd.xlane.f32.xlu0 %v253_v16  ;;  %899 = vmatpush3.msra.mxu0 %v1111_v31  ;;  %v1164_v16 = vsub.s32 %v351_v57, %v1142_v43  ;;  %v306_v57 = vld [vmem:[%s1282_s3] sm:$0xff] }
  0x1a   : > { %257 = vadd.xlane.f32.xlu1 %v256_v17  ;;  %900 = vmatprep.subr.mxu0 %v968_v24  ;;  %v365_v17 = vadd.s32 4294967240, %v318_v42 }
  0x1b   : > { %901 = vmatpush3.msra.mxu0 %v1117_v32 }
  0x1c   : > { %931 = vmatprep.subr.mxu0 %v968_v24  ;;  %v1175_v41 = vsub.s32 %v365_v17, %v1142_v43 }
  0x1d   : > { %260 = vadd.xlane.f32.xlu0 %v259_v22 }
  0x1e   : > { %263 = vadd.xlane.f32.xlu1 %v262_v23 }
  0x21   : > { %274 = vmax.xlane.f32.xlu0 %v273_v33 }
  0x22   : > { %277 = vmax.xlane.f32.xlu1 %v276_v34 }
  0x25   : > { %280 = vmax.xlane.f32.xlu0 %v279_v35 }
  0x26   : > { %283 = vmax.xlane.f32.xlu1 %v282_v36 }
  0x29   : > { %286 = vmax.xlane.f32.xlu0 %v285_v37 }
  0x2a   : > { %289 = vmax.xlane.f32.xlu1 %v288_v38  ;;  %v1171_v38 = vsub.s32 %v358_v3, %v1142_v43 }
  0x2d   : > { %292 = vmax.xlane.f32.xlu0 %v291_v39 }
  0x2e   : > { %295 = vmax.xlane.f32.xlu1 %v294_v40 }
  0x9a   : > { %v243_v45 = vpop.xlane.xlu0 %242 }
  0x9b   : > { %v249_v48 = vpop.xlane.xlu1 %248  ;;  %v265_v50 = vmul.f32 0.00390625, %v243_v45 }
  0x9c   : > { %v267_v54 = vmul.f32 0.00390625, %v249_v48 }
  0x9d   : > { %v322_v61 = vrot.slane %v265_v50, %v1145_v49 }
  0x9e   : > { %v246_v55 = vpop.xlane.xlu0 %245  ;;  %v334_v7 = vrot.slane %v267_v54, %v1151_v53 }
  0x9f   : > { %v266_v58 = vmul.f32 0.00390625, %v246_v55  ;;  %v252_v59 = vpop.xlane.xlu1 %251  ;;  %v307_v55 = vld [vmem:[%s1282_s3 + $0x8] sm:$0xff] }
  0xa0   : > { %v268_v60 = vmul.f32 0.00390625, %v252_v59  ;;  %906 = vmatpush3.msra.mxu1 %v307_v55 }
  0xa1   : > { %v327_v62 = vrot.slane %v266_v58, %v1148_v51  ;;  %907 = vmatprep.subr.mxu1 %v968_v24  ;;  %v305_v58 = vld [vmem:[%s1281_s2] sm:$0x1] }
  0xa2   : > { %v341_v10 = vrot.slane %v268_v60, %v1154_v56  ;;  %v255_v11 = vpop.xlane.xlu0 %254  ;;  %908 = vmatpush3.msra.mxu1 %v306_v57 }
  0xa3   : > { %v329_v22 = vsel %vm328_vm1, %v327_v62, %v322_v61  ;;  %v269_v23 = vmul.f32 0.00390625, %v255_v11  ;;  %v258_v33 = vpop.xlane.xlu1 %257  ;;  %912 = vmatprep.subr.mxu1 %v968_v24 }
  0xa4   : > { %v336_v34 = vsel %vm335_vm2, %v334_v7, %v329_v22  ;;  %v270_v35 = vmul.f32 0.00390625, %v258_v33 }
  0xa5   : > { %v343_v36 = vsel %vm342_vm3, %v341_v10, %v336_v34  ;;  %v348_v37 = vrot.slane %v269_v23, %v1159_v63 }
  0xa6   : > { %v355_v39 = vrot.slane %v270_v35, %v1164_v16  ;;  %v261_v40 = vpop.xlane.xlu0 %260 }
  0xa7   : > { %v350_v42 = vsel %vm349_vm4, %v348_v37, %v343_v36  ;;  %v271_v44 = vmul.f32 0.00390625, %v261_v40  ;;  %v264_v45 = vpop.xlane.xlu1 %263 }
  0xa8   : > { %v272_v46 = vmul.f32 0.00390625, %v264_v45  ;;  %v357_v48 = vsel %vm356_vm5, %v355_v39, %v350_v42 }
  0xa9   : > { %v362_v47 = vrot.slane %v271_v44, %v1171_v38 }
  0xaa   : > { %v369_v50 = vrot.slane %v272_v46, %v1175_v41  ;;  %v275_v62 = vpop.xlane.xlu0 %274 }
  0xab   : > { %v364_v52 = vsel %vm363_vm6, %v362_v47, %v357_v48  ;;  %v278_v3 = vpop.xlane.xlu1 %277  ;;  %v532_v7 = vrot.slane %v275_v62, %v1145_v49 }
  0xac   : > { %v371_v54 = vsel %vm370_vm7, %v369_v50, %v364_v52  ;;  %v536_v10 = vrot.slane %v278_v3, %v1148_v51 }
  0xad   : > { %903 = vmatmul.mubr.msk.f32.vlgmr.msra.gmra.mxu0 %vm372_vm8, %v371_v54 }
  0xae   : > { %935 = vmatprep.mubr.msk.f32.mxu0 %vm969_vm0, %v968_v24  ;;  %932 = vmatpush3.msra.mxu0 %v307_v55  ;;  %v281_v11 = vpop.xlane.xlu0 %280  ;;  %v537_v23 = vsel %vm328_vm1, %v536_v10, %v532_v7  ;;  %v724_v55 = vsub.s32 0, %v1142_v43 }
  0xaf   : > { %933 = vmatprep.subr.mxu0 %v968_v24  ;;  %v541_v17 = vrot.slane %v281_v11, %v1151_v53  ;;  %v284_v22 = vpop.xlane.xlu1 %283 }
  0xb0   : > { %934 = vmatpush3.msra.mxu0 %v306_v57  ;;  %v546_v34 = vrot.slane %v284_v22, %v1154_v56 }
  0xb1   : > { %v542_v36 = vsel %vm335_vm2, %v541_v17, %v537_v23 }
  0xb2   : > { %v287_v35 = vpop.xlane.xlu0 %286  ;;  %v547_v53 = vsel %vm342_vm3, %v546_v34, %v542_v36 }
  0xb3   : > { %v551_v49 = vrot.slane %v287_v35, %v1159_v63  ;;  %v290_v51 = vpop.xlane.xlu1 %289 }
  0xb4   : > { %v556_v56 = vrot.slane %v290_v51, %v1164_v16 }
  0xb6   : > { %v293_v37 = vpop.xlane.xlu0 %292 }
  0xb7   : > { %v561_v63 = vrot.slane %v293_v37, %v1171_v38  ;;  %v296_v39 = vpop.xlane.xlu1 %295 }
  0xb8   : > { %v566_v16 = vrot.slane %v296_v39, %v1175_v41 }
 0x16d   : > { %v441_v59 = vpop.f32.mrf.mxu0 }
 0x16e   : > { %v442_v60 = vadd.f32 %v441_v59, %v305_v58 }
 0x16f   : > { %v904_v61 = vpop.f32.mrf.mxu0 }
 0x170   : > { %948 = vtanh.f32 %v442_v60 }
 0x17d   : > { %v949_v33 = vpop.eup %948 }
 0x17e   : > { %910 = vmatmul.mubr.msk.f32.vlgmr.msra.gmra.mxu1 %vm446_vm9, %v949_v33 }
 0x17f   : > { %913 = vmatpush3.msra.mxu1 %v1068_v25  ;;  %928 = vmatprep.mubr.msk.f32.mxu1 %vm969_vm0, %v968_v24  ;;  %v552_v25 = vsel %vm349_vm4, %v551_v49, %v547_v53 }
 0x180   : > { %914 = vmatprep.subr.mxu1 %v968_v24 }
 0x181   : > { %915 = vmatpush3.msra.mxu1 %v1075_v26  ;;  %v557_v26 = vsel %vm356_vm5, %v556_v56, %v552_v25 }
 0x182   : > { %916 = vmatprep.subr.mxu1 %v968_v24 }
 0x183   : > { %917 = vmatpush3.msra.mxu1 %v1083_v27  ;;  %v562_v27 = vsel %vm363_vm6, %v561_v63, %v557_v26 }
 0x184   : > { %918 = vmatprep.subr.mxu1 %v968_v24 }
 0x185   : > { %919 = vmatpush3.msra.mxu1 %v1090_v28  ;;  %v567_v28 = vsel %vm370_vm7, %v566_v16, %v562_v27 }
 0x186   : > { %920 = vmatprep.subr.mxu1 %v968_v24 }
 0x187   : > { %921 = vmatpush3.msra.mxu1 %v1097_v29 }
 0x188   : > { %922 = vmatprep.subr.mxu1 %v968_v24 }
 0x189   : > { %923 = vmatpush3.msra.mxu1 %v1104_v30 }
 0x18a   : > { %924 = vmatprep.subr.mxu1 %v968_v24 }
 0x18b   : > { %925 = vmatpush3.msra.mxu1 %v1111_v31  ;;  %v308_v31 = vld [vmem:[%s1283_s4] sm:$0x1] }
 0x18c   : > { %926 = vmatprep.subr.mxu1 %v968_v24 }
 0x18d   : > { %927 = vmatpush3.msra.mxu1 %v1117_v32 }
 0x18e   : > { %929 = vmatmul.mubr.msk.f32.vlgmr.msra.gmra.mxu1 %vm372_vm8, %v567_v28 }
 0x23e   : > { %v516_v29 = vpop.f32.mrf.mxu1 }
 0x23f   : > { %v517_v24 = vadd.f32 %v516_v29, %v308_v31 }
 0x240   : > { %v911_v38 = vpop.f32.mrf.mxu1 }
 0x24e   : > { %v636_v40 = vpop.f32.mrf.mxu1 }
 0x24f   : > { %v637_v41 = vadd.f32 %v636_v40, %v305_v58 }
 0x250   : > { %v930_v42 = vpop.f32.mrf.mxu1 }
 0x251   : > { %950 = vtanh.f32 %v637_v41 }
 0x252   : > { %952 = vtanh.f32 %v517_v24 }
 0x25e   : > { %v951_v30 = vpop.eup %950 }
 0x25f   : > { %936 = vmatmul.mubr.msk.f32.vlgmr.msra.gmra.mxu0 %vm446_vm9, %v951_v30  ;;  %v953_v46 = vpop.eup %952 }
 0x31f   : > { %v710_v44 = vpop.f32.mrf.mxu0 }
 0x320   : > { %v711_v45 = vadd.f32 %v710_v44, %v308_v31 }
 0x321   : > { %v937_v32 = vpop.f32.mrf.mxu0 }
 0x322   : > { %954 = vtanh.f32 %v711_v45 }
 0x32f   : > { %v955_v47 = vpop.eup %954 }
 0x330   : > { %v715_v48 = vadd.f32 %v955_v47, %v953_v46 }
 0x332   : > { %v857_v50 = vmul.f32 -1.442695, %v715_v48 }
 0x334   : > { %956 = vpow2.f32 %v857_v50 }
 0x341   : > { %v957_v52 = vpop.eup %956 }
 0x342   : > { %v719_v54 = vadd.f32 1.0, %v957_v52 }
 0x344   : > { %958 = vrcp.f32 %v719_v54 }
 0x351   : > { %v959_v57 = vpop.eup %958 }
 0x352   : > { %v725_v58 = vrot.slane %v959_v57, %v724_v55 }
 0x354   : > { %731 = vbcast.lane.b32.xlu1 %v725_v58, 264  ;;  %727 = vbcast.lane.b32.xlu0 %v725_v58, 256 }
 0x358   : > { %735 = vbcast.lane.b32.xlu1 %v725_v58, 272  ;;  %743 = vbcast.lane.b32.xlu0 %v725_v58, 288 }
 0x35c   : > { %739 = vbcast.lane.b32.xlu1 %v725_v58, 280  ;;  %751 = vbcast.lane.b32.xlu0 %v725_v58, 304 }
 0x360   : > { %747 = vbcast.lane.b32.xlu1 %v725_v58, 296 }
 0x364   : > { %755 = vbcast.lane.b32.xlu1 %v725_v58, 312 }
 0x3c6   : > { %v732_v43 = vpop.permute.xlu1 %731  ;;  %v728_v59 = vpop.permute.xlu0 %727 }
 0x3c7   : > { %v759_v60 = vmul.f32 %v732_v43, %v1026_v5  ;;  %v760_v61 = vmul.f32 %v732_v43, %v1028_v6  ;;  %v757_v62 = vmul.f32 %v728_v59, %v1016_v0  ;;  %v758_v3 = vmul.f32 %v728_v59, %v1018_v1 }
 0x3c9   : > { %775 = vst [vmem:[%s1242_s28 + $0x10] sm:$0xff] %v759_v60  ;;  %776 = vst [vmem:[%s1242_s28 + $0x18] sm:$0xff] %v760_v61 }
 0x3ca   : > { %773 = vst [vmem:[%s1242_s28] sm:$0xff] %v757_v62  ;;  %774 = vst [vmem:[%s1242_s28 + $0x8] sm:$0xff] %v758_v3  ;;  %v736_v7 = vpop.permute.xlu1 %735  ;;  %v744_v10 = vpop.permute.xlu0 %743 }
 0x3cb   : > { %v761_v11 = vmul.f32 %v736_v7, %v1020_v2  ;;  %v762_v5 = vmul.f32 %v736_v7, %v1024_v4  ;;  %v765_v6 = vmul.f32 %v744_v10, %v1040_v12  ;;  %v766_v0 = vmul.f32 %v744_v10, %v1042_v13 }
 0x3cd   : > { %777 = vst [vmem:[%s1242_s28 + $0x20] sm:$0xff] %v761_v11  ;;  %778 = vst [vmem:[%s1242_s28 + $0x28] sm:$0xff] %v762_v5 }
 0x3ce   : > { %781 = vst [vmem:[%s1242_s28 + $0x40] sm:$0xff] %v765_v6  ;;  %782 = vst [vmem:[%s1242_s28 + $0x48] sm:$0xff] %v766_v0  ;;  %v740_v1 = vpop.permute.xlu1 %739  ;;  %v752_v17 = vpop.permute.xlu0 %751 }
 0x3cf   : > { %v763_v22 = vmul.f32 %v740_v1, %v1032_v8  ;;  %v764_v2 = vmul.f32 %v740_v1, %v1034_v9  ;;  %v769_v4 = vmul.f32 %v752_v17, %v1052_v18  ;;  %v770_v12 = vmul.f32 %v752_v17, %v1054_v19 }
 0x3d1   : > { %779 = vst [vmem:[%s1242_s28 + $0x30] sm:$0xff] %v763_v22  ;;  %780 = vst [vmem:[%s1242_s28 + $0x38] sm:$0xff] %v764_v2 }
 0x3d2   : > { %785 = vst [vmem:[%s1242_s28 + $0x60] sm:$0xff] %v769_v4  ;;  %786 = vst [vmem:[%s1242_s28 + $0x68] sm:$0xff] %v770_v12  ;;  %v748_v13 = vpop.permute.xlu1 %747 }
 0x3d3   : > { %v767_v23 = vmul.f32 %v748_v13, %v1044_v14  ;;  %v768_v33 = vmul.f32 %v748_v13, %v1046_v15 }
 0x3d5   : > { %783 = vst [vmem:[%s1242_s28 + $0x50] sm:$0xff] %v767_v23  ;;  %784 = vst [vmem:[%s1242_s28 + $0x58] sm:$0xff] %v768_v33 }
 0x3d6   : > { %v756_v8 = vpop.permute.xlu1 %755 }
 0x3d7   : > { %v771_v34 = vmul.f32 %v756_v8, %v1056_v20  ;;  %v772_v9 = vmul.f32 %v756_v8, %v1058_v21 }
 0x3d9   : > { %787 = vst [vmem:[%s1242_s28 + $0x70] sm:$0xff] %v771_v34  ;;  %788 = vst [vmem:[%s1242_s28 + $0x78] sm:$0xff] %v772_v9 }
 0x3da PF: > { %s15_s18 = sadd.s32 1, %s966_s18  }
 0x3db   : > { %p12_p4 = scmp.ge.s32.totalorder %s15_s18, 4  }
 0x3dd   :  { %14 = sbr.rel (!%p12_p4) target bundleno = 1 (0x1), region = 70 }

</bundles_post_ra>
